<compile_context>
chip_gen: v6e
topology: v6e:2x2x1
jax: 0.10.0
libtpu: 0.0.40
codegen_flags: <defaults>
</compile_context>

<pallas_src>
import jax
import jax.numpy as jnp
import numpy as np
from jax.experimental import pallas as pl
from jax.experimental.pallas import tpu as pltpu

LANES = 128
SUBLANES = 8


def adversary_kernel(pidx_ref, xw_ref,                 # VMEM (TR,128) blocks
                     t0_ref, t1_ref, beff_ref,         # SMEM resident scalars
                     s_ref):                           # VMEM (TR,128) output
    n0 = t0_ref.shape[0]
    n1 = t1_ref.shape[0]

    pidx = pidx_ref[...]                               # (TR,128) int32 packed
    idx0 = pidx >> 16                                  # high halfword
    idx1 = pidx & 0xFFFF                               # low halfword

    # Folded-embedding lookups via select-accumulate: two independent chains.
    e0 = jnp.full(pidx.shape, t0_ref[0], dtype=jnp.float32)
    for c in range(1, n0):
        e0 = jnp.where(idx0 == c, t0_ref[c], e0)
    e1 = jnp.full(pidx.shape, t1_ref[0], dtype=jnp.float32)
    for c in range(1, n1):
        e1 = jnp.where(idx1 == c, t1_ref[c], e1)

    y = (xw_ref[...] + beff_ref[0]) + (e0 + e1)        # per-row affine (VPU)
    s_ref[...] = jax.nn.sigmoid(y)                     # EUP


def adversary_forward(x_cat, x_num, params, *, rows_per_block=131072):
    """x_cat: (B, 2) int32, x_num: (B, n_num) float. Returns (B, 1) f32."""
    t0, t1, w1, b1, w2, b2, w3, b3 = params
    f0, f1 = t0.shape[1], t1.shape[1]
    n0, n1 = t0.shape[0], t1.shape[0]
    B = x_cat.shape[0]

    # ---- exact algebraic collapse of the activation-free Linear stack ------
    # NOTE: reorders f32 accumulation vs. the layer-by-layer forward; holds
    # 1e-5 tolerance at these sizes (error grows with n_hidden).
    w23 = w2 @ w3                                                     # (H1, 1)
    weff = w1 @ w23                                                   # (d_in,1)
    beff = (b1 @ w23 + b2 @ w3 + b3).reshape(1).astype(jnp.float32)   # (1,)
    t0_eff = (t0 @ weff[:f0]).reshape(-1).astype(jnp.float32)         # (n0,)
    t1_eff = (t1 @ weff[f0:f0 + f1]).reshape(-1).astype(jnp.float32)  # (n1,)
    w_num = weff[f0 + f1:].astype(jnp.float32)                        # (n_num,1)

    # ---- hoisted XLA work: numeric matvec (4 B/row) + index packing --------
    xw = (x_num.astype(jnp.float32) @ w_num).reshape(-1)              # (B,)
    pidx = ((x_cat[:, 0].astype(jnp.int32) << 16)
            | x_cat[:, 1].astype(jnp.int32))                          # (B,)

    # ---- 2D (sublane x lane) batch slab + block sizing ----------------------
    R = pl.cdiv(B, LANES)                                # sublane rows needed
    tr_target = max(SUBLANES,
                    (rows_per_block // LANES // SUBLANES) * SUBLANES)
    TR = min(tr_target, pl.cdiv(R, SUBLANES) * SUBLANES)
    R_pad = pl.cdiv(R, TR) * TR
    G = R_pad // TR
    # Prefer >= 2 blocks so ("parallel",) can shard across both v7x TCs.
    if G == 1 and TR >= 2 * SUBLANES:
        TR = pl.cdiv(TR // 2, SUBLANES) * SUBLANES
        R_pad = pl.cdiv(R, TR) * TR
        G = R_pad // TR
    B_pad = R_pad * LANES
    pad = B_pad - B

    pidx2d = jnp.pad(pidx, (0, pad)).reshape(R_pad, LANES)
    xw2d = jnp.pad(xw, (0, pad)).reshape(R_pad, LANES)

    smem = pltpu.MemorySpace.SMEM
    cost = pl.CostEstimate(
        flops=int(B_pad * (2 * (n0 + n1) + 5)),
        transcendentals=int(B_pad),
        bytes_accessed=int(B_pad * 12 + 4 * (n0 + n1 + 1)),
    )
    buf_bytes = 3 * 2 * TR * LANES * 4                   # dbl-buffered tiles
    vmem_limit = int(min(64 << 20, max(32 << 20, 2 * buf_bytes)))

    s2d = pl.pallas_call(
        adversary_kernel,
        out_shape=jax.ShapeDtypeStruct((R_pad, LANES), jnp.float32),
        grid=(G,),
        in_specs=[
            pl.BlockSpec((TR, LANES), lambda i: (i, 0)),                 # pidx
            pl.BlockSpec((TR, LANES), lambda i: (i, 0)),                 # xw
            pl.BlockSpec((n0,), lambda i: (0,), memory_space=smem),      # t0
            pl.BlockSpec((n1,), lambda i: (0,), memory_space=smem),      # t1
            pl.BlockSpec((1,), lambda i: (0,), memory_space=smem),       # beff
        ],
        out_specs=pl.BlockSpec((TR, LANES), lambda i: (i, 0)),
        compiler_params=pltpu.CompilerParams(
            dimension_semantics=("parallel",),
            vmem_limit_bytes=vmem_limit),
        cost_estimate=cost,
    )(pidx2d, xw2d, t0_eff, t1_eff, beff)

    # ---- finalize in XLA: mean over VALID rows only, then normalize --------
    # (padded rows are sliced off BEFORE the mean — keep it that way)
    s = s2d.reshape(-1)[:B].reshape(B, 1)
    m = jnp.mean(s)
    d = jnp.maximum(m, jnp.float32(1e-4))                # torch.max([mean,1e-4])
    return s / d + 1.0


if __name__ == "__main__":
    # Small shapes consistent with the module:
    #   embedding_size = [(6, 3), (10, 4)], n_num_cols = 5, n_hidden = [32, 16]
    B = 8
    embedding_size = [(6, 3), (10, 4)]
    n_num = 5
    n_hidden = [32, 16]
    d_in = sum(f for _, f in embedding_size) + n_num     # 12

    key = jax.random.PRNGKey(0)
    keys = jax.random.split(key, 12)

    t0 = jax.random.normal(keys[0], embedding_size[0], jnp.float32) * 0.1
    t1 = jax.random.normal(keys[1], embedding_size[1], jnp.float32) * 0.1
    w1 = jax.random.normal(keys[2], (d_in, n_hidden[0]), jnp.float32) * 0.1
    b1 = jax.random.normal(keys[3], (1, n_hidden[0]), jnp.float32) * 0.1
    w2 = jax.random.normal(keys[4], (n_hidden[0], n_hidden[1]), jnp.float32) * 0.1
    b2 = jax.random.normal(keys[5], (1, n_hidden[1]), jnp.float32) * 0.1
    w3 = jax.random.normal(keys[6], (n_hidden[1], 1), jnp.float32) * 0.1
    b3 = jax.random.normal(keys[7], (1, 1), jnp.float32) * 0.1
    params = (t0, t1, w1, b1, w2, b2, w3, b3)

    x_cat = jnp.stack(
        [jax.random.randint(keys[8], (B,), 0, embedding_size[0][0]),
         jax.random.randint(keys[9], (B,), 0, embedding_size[1][0])],
        axis=1).astype(jnp.int32)
    x_num = jax.random.normal(keys[10], (B, n_num), jnp.float32)

    out = adversary_forward(x_cat, x_num, params)
    out = jax.block_until_ready(out)

    # Pure-JAX reference of the PyTorch forward (un-collapsed).
    e0 = t0[x_cat[:, 0]]
    e1 = t1[x_cat[:, 1]]
    x = jnp.concatenate([e0, e1, x_num], axis=1)
    y = x @ w1 + b1
    y = y @ w2 + b2
    y = y @ w3 + b3
    s = jax.nn.sigmoid(y)
    ref = s / jnp.maximum(jnp.mean(s), 1e-4) + 1.0

    assert out.shape == (B, 1)
    np.testing.assert_allclose(np.asarray(out), np.asarray(ref),
                               rtol=1e-5, atol=1e-5)
    print("KERNEL_OK")
</pallas_src>

<mosaic_0001>
module attributes {stable_mosaic.version = 11 : i64} {
  func.func @adversary_kernel(%arg0: i32, %arg1: memref<8x128xi32, #tpu.memory_space<vmem>>, %arg2: memref<8x128xf32, #tpu.memory_space<vmem>>, %arg3: memref<6xf32, #tpu.memory_space<smem>>, %arg4: memref<10xf32, #tpu.memory_space<smem>>, %arg5: memref<1xf32, #tpu.memory_space<smem>>, %arg6: memref<8x128xf32, #tpu.memory_space<vmem>>) attributes {dimension_semantics = [#tpu.dimension_semantics<parallel>], iteration_bounds = array<i64: 1>, scalar_prefetch = 0 : i64, scratch_operands = 0 : i64, tpu.core_type = #tpu.core_type<tc>, window_params = [{transform_indices = @transform_0, window_bounds = array<i64: 8, 128>}, {transform_indices = @transform_1, window_bounds = array<i64: 8, 128>}, {transform_indices = @transform_2, window_bounds = array<i64: 6>}, {transform_indices = @transform_3, window_bounds = array<i64: 10>}, {transform_indices = @transform_4, window_bounds = array<i64: 1>}, {transform_indices = @transform_5, window_bounds = array<i64: 8, 128>}]} {
    %c0 = arith.constant 0 : index
    %c0_0 = arith.constant 0 : index
    %0 = vector.load %arg1[%c0, %c0_0] : memref<8x128xi32, #tpu.memory_space<vmem>>, vector<8x128xi32>
    %c16_i32 = arith.constant 16 : i32
    %1 = vector.broadcast %c16_i32 : i32 to vector<8x128xi32>
    %2 = arith.shrsi %0, %1 : vector<8x128xi32>
    %c65535_i32 = arith.constant 65535 : i32
    %3 = vector.broadcast %c65535_i32 : i32 to vector<8x128xi32>
    %4 = arith.andi %0, %3 : vector<8x128xi32>
    %c0_1 = arith.constant 0 : index
    %5 = memref.load %arg3[%c0_1] : memref<6xf32, #tpu.memory_space<smem>>
    %6 = vector.broadcast %5 : f32 to vector<8x128xf32>
    %c1_i32 = arith.constant 1 : i32
    %7 = vector.broadcast %c1_i32 : i32 to vector<8x128xi32>
    %8 = arith.cmpi eq, %2, %7 : vector<8x128xi32>
    %c1 = arith.constant 1 : index
    %9 = memref.load %arg3[%c1] : memref<6xf32, #tpu.memory_space<smem>>
    %10 = vector.broadcast %9 : f32 to vector<8x128xf32>
    %11 = arith.select %8, %10, %6 : vector<8x128xi1>, vector<8x128xf32>
    %c2_i32 = arith.constant 2 : i32
    %12 = vector.broadcast %c2_i32 : i32 to vector<8x128xi32>
    %13 = arith.cmpi eq, %2, %12 : vector<8x128xi32>
    %c2 = arith.constant 2 : index
    %14 = memref.load %arg3[%c2] : memref<6xf32, #tpu.memory_space<smem>>
    %15 = vector.broadcast %14 : f32 to vector<8x128xf32>
    %16 = arith.select %13, %15, %11 : vector<8x128xi1>, vector<8x128xf32>
    %c3_i32 = arith.constant 3 : i32
    %17 = vector.broadcast %c3_i32 : i32 to vector<8x128xi32>
    %18 = arith.cmpi eq, %2, %17 : vector<8x128xi32>
    %c3 = arith.constant 3 : index
    %19 = memref.load %arg3[%c3] : memref<6xf32, #tpu.memory_space<smem>>
    %20 = vector.broadcast %19 : f32 to vector<8x128xf32>
    %21 = arith.select %18, %20, %16 : vector<8x128xi1>, vector<8x128xf32>
    %c4_i32 = arith.constant 4 : i32
    %22 = vector.broadcast %c4_i32 : i32 to vector<8x128xi32>
    %23 = arith.cmpi eq, %2, %22 : vector<8x128xi32>
    %c4 = arith.constant 4 : index
    %24 = memref.load %arg3[%c4] : memref<6xf32, #tpu.memory_space<smem>>
    %25 = vector.broadcast %24 : f32 to vector<8x128xf32>
    %26 = arith.select %23, %25, %21 : vector<8x128xi1>, vector<8x128xf32>
    %c5_i32 = arith.constant 5 : i32
    %27 = vector.broadcast %c5_i32 : i32 to vector<8x128xi32>
    %28 = arith.cmpi eq, %2, %27 : vector<8x128xi32>
    %c5 = arith.constant 5 : index
    %29 = memref.load %arg3[%c5] : memref<6xf32, #tpu.memory_space<smem>>
    %30 = vector.broadcast %29 : f32 to vector<8x128xf32>
    %31 = arith.select %28, %30, %26 : vector<8x128xi1>, vector<8x128xf32>
    %c0_2 = arith.constant 0 : index
    %32 = memref.load %arg4[%c0_2] : memref<10xf32, #tpu.memory_space<smem>>
    %33 = vector.broadcast %32 : f32 to vector<8x128xf32>
    %c1_i32_3 = arith.constant 1 : i32
    %34 = vector.broadcast %c1_i32_3 : i32 to vector<8x128xi32>
    %35 = arith.cmpi eq, %4, %34 : vector<8x128xi32>
    %c1_4 = arith.constant 1 : index
    %36 = memref.load %arg4[%c1_4] : memref<10xf32, #tpu.memory_space<smem>>
    %37 = vector.broadcast %36 : f32 to vector<8x128xf32>
    %38 = arith.select %35, %37, %33 : vector<8x128xi1>, vector<8x128xf32>
    %c2_i32_5 = arith.constant 2 : i32
    %39 = vector.broadcast %c2_i32_5 : i32 to vector<8x128xi32>
    %40 = arith.cmpi eq, %4, %39 : vector<8x128xi32>
    %c2_6 = arith.constant 2 : index
    %41 = memref.load %arg4[%c2_6] : memref<10xf32, #tpu.memory_space<smem>>
    %42 = vector.broadcast %41 : f32 to vector<8x128xf32>
    %43 = arith.select %40, %42, %38 : vector<8x128xi1>, vector<8x128xf32>
    %c3_i32_7 = arith.constant 3 : i32
    %44 = vector.broadcast %c3_i32_7 : i32 to vector<8x128xi32>
    %45 = arith.cmpi eq, %4, %44 : vector<8x128xi32>
    %c3_8 = arith.constant 3 : index
    %46 = memref.load %arg4[%c3_8] : memref<10xf32, #tpu.memory_space<smem>>
    %47 = vector.broadcast %46 : f32 to vector<8x128xf32>
    %48 = arith.select %45, %47, %43 : vector<8x128xi1>, vector<8x128xf32>
    %c4_i32_9 = arith.constant 4 : i32
    %49 = vector.broadcast %c4_i32_9 : i32 to vector<8x128xi32>
    %50 = arith.cmpi eq, %4, %49 : vector<8x128xi32>
    %c4_10 = arith.constant 4 : index
    %51 = memref.load %arg4[%c4_10] : memref<10xf32, #tpu.memory_space<smem>>
    %52 = vector.broadcast %51 : f32 to vector<8x128xf32>
    %53 = arith.select %50, %52, %48 : vector<8x128xi1>, vector<8x128xf32>
    %c5_i32_11 = arith.constant 5 : i32
    %54 = vector.broadcast %c5_i32_11 : i32 to vector<8x128xi32>
    %55 = arith.cmpi eq, %4, %54 : vector<8x128xi32>
    %c5_12 = arith.constant 5 : index
    %56 = memref.load %arg4[%c5_12] : memref<10xf32, #tpu.memory_space<smem>>
    %57 = vector.broadcast %56 : f32 to vector<8x128xf32>
    %58 = arith.select %55, %57, %53 : vector<8x128xi1>, vector<8x128xf32>
    %c6_i32 = arith.constant 6 : i32
    %59 = vector.broadcast %c6_i32 : i32 to vector<8x128xi32>
    %60 = arith.cmpi eq, %4, %59 : vector<8x128xi32>
    %c6 = arith.constant 6 : index
    %61 = memref.load %arg4[%c6] : memref<10xf32, #tpu.memory_space<smem>>
    %62 = vector.broadcast %61 : f32 to vector<8x128xf32>
    %63 = arith.select %60, %62, %58 : vector<8x128xi1>, vector<8x128xf32>
    %c7_i32 = arith.constant 7 : i32
    %64 = vector.broadcast %c7_i32 : i32 to vector<8x128xi32>
    %65 = arith.cmpi eq, %4, %64 : vector<8x128xi32>
    %c7 = arith.constant 7 : index
    %66 = memref.load %arg4[%c7] : memref<10xf32, #tpu.memory_space<smem>>
    %67 = vector.broadcast %66 : f32 to vector<8x128xf32>
    %68 = arith.select %65, %67, %63 : vector<8x128xi1>, vector<8x128xf32>
    %c8_i32 = arith.constant 8 : i32
    %69 = vector.broadcast %c8_i32 : i32 to vector<8x128xi32>
    %70 = arith.cmpi eq, %4, %69 : vector<8x128xi32>
    %c8 = arith.constant 8 : index
    %71 = memref.load %arg4[%c8] : memref<10xf32, #tpu.memory_space<smem>>
    %72 = vector.broadcast %71 : f32 to vector<8x128xf32>
    %73 = arith.select %70, %72, %68 : vector<8x128xi1>, vector<8x128xf32>
    %c9_i32 = arith.constant 9 : i32
    %74 = vector.broadcast %c9_i32 : i32 to vector<8x128xi32>
    %75 = arith.cmpi eq, %4, %74 : vector<8x128xi32>
    %c9 = arith.constant 9 : index
    %76 = memref.load %arg4[%c9] : memref<10xf32, #tpu.memory_space<smem>>
    %77 = vector.broadcast %76 : f32 to vector<8x128xf32>
    %78 = arith.select %75, %77, %73 : vector<8x128xi1>, vector<8x128xf32>
    %c0_13 = arith.constant 0 : index
    %c0_14 = arith.constant 0 : index
    %79 = vector.load %arg2[%c0_13, %c0_14] : memref<8x128xf32, #tpu.memory_space<vmem>>, vector<8x128xf32>
    %c0_15 = arith.constant 0 : index
    %80 = memref.load %arg5[%c0_15] : memref<1xf32, #tpu.memory_space<smem>>
    %81 = vector.broadcast %80 : f32 to vector<8x128xf32>
    %82 = arith.addf %79, %81 : vector<8x128xf32>
    %83 = arith.addf %31, %78 : vector<8x128xf32>
    %84 = arith.addf %82, %83 : vector<8x128xf32>
    %85 = arith.negf %84 : vector<8x128xf32>
    %86 = math.exp %85 : vector<8x128xf32>
    %cst = arith.constant 1.000000e+00 : f32
    %87 = vector.broadcast %cst : f32 to vector<8x128xf32>
    %88 = arith.addf %87, %86 : vector<8x128xf32>
    %89 = arith.divf %87, %88 : vector<8x128xf32>
    %c0_16 = arith.constant 0 : index
    %c0_17 = arith.constant 0 : index
    %90 = vector.load %arg6[%c0_16, %c0_17] : memref<8x128xf32, #tpu.memory_space<vmem>>, vector<8x128xf32>
    tpu.vector_store %arg6[%c0_16, %c0_17], %89 {strides = array<i32>} : memref<8x128xf32, #tpu.memory_space<vmem>>, vector<8x128xf32>,
    return
  }
  func.func @transform_0(%arg0: i32) -> (i32, i32) {
    %c0_i32 = arith.constant 0 : i32
    %c0_i32_0 = arith.constant 0 : i32
    return %arg0, %c0_i32 : i32, i32
  }
  func.func @transform_1(%arg0: i32) -> (i32, i32) {
    %c0_i32 = arith.constant 0 : i32
    %c0_i32_0 = arith.constant 0 : i32
    return %arg0, %c0_i32 : i32, i32
  }
  func.func @transform_2(%arg0: i32) -> i32 {
    %c0_i32 = arith.constant 0 : i32
    %c0_i32_0 = arith.constant 0 : i32
    return %c0_i32 : i32
  }
  func.func @transform_3(%arg0: i32) -> i32 {
    %c0_i32 = arith.constant 0 : i32
    %c0_i32_0 = arith.constant 0 : i32
    return %c0_i32 : i32
  }
  func.func @transform_4(%arg0: i32) -> i32 {
    %c0_i32 = arith.constant 0 : i32
    %c0_i32_0 = arith.constant 0 : i32
    return %c0_i32 : i32
  }
  func.func @transform_5(%arg0: i32) -> (i32, i32) {
    %c0_i32 = arith.constant 0 : i32
    %c0_i32_0 = arith.constant 0 : i32
    return %arg0, %c0_i32 : i32, i32
  }
}

</mosaic_0001>

<bundles_post_ra>
// kernel: tpu_custom_call.1
= control target key start
LH: loop header
LB: loop body
LE: loop exit
PB: predicated region body
PF: predicated region fallthrough
CT: control target
= control target key end

     0   :  { %11 = vsyncpa [#allocation4], 0  ;;  %s348_s0 = inlined_call_operand.hbm [shape: s32[8,128], index: 0, kind: input, shape index: {}]   ;;  %s349_s1 = inlined_call_operand.hbm [shape: f32[8,128], index: 1, kind: input, shape index: {}]   ;;  %s350_s2 = inlined_call_operand.vmem [shape: f32[6], index: 2, kind: input, shape index: {}]   ;;  %s351_s3 = inlined_call_operand.vmem [shape: f32[10], index: 3, kind: input, shape index: {}]   ;;  %s352_s4 = inlined_call_operand.<no memory space> [shape: f32[1], index: 4, kind: input, shape index: {}]   ;;  %s353_s5 = inlined_call_operand.hbm [shape: f32[8,128], index: 5, kind: output, shape index: {}]  }
   0x1   :  { %12 = vsyncpa [#allocation8], 0 }
   0x2   :  { %13 = vsyncpa [#allocation6], 0 }
   0x3   :  { %14 = vsyncpa [#allocation11], 0 }
   0x4   :  { %15 = vsyncpa [#allocation5], 0  ;;  %s283_s18 = smov [#allocation3]   ;;  %s284_s20 = smov [#allocation7]  }
   0x5   :  { %s22_s19 = sshll.u32 %s283_s18, 4  ;;  %s32_s21 = sshll.u32 %s284_s20, 4  ;;  %s23_s19 = int_to_ptr.vmem [resolvable:$true] %s22_s19  ;;  %s33_s21 = int_to_ptr.vmem [resolvable:$true] %s32_s21 }
   0x6   :  { %s197_s22 = scalar_lea.vmem %s23_s19, 128  ;;  %p202_p1 = scmp.lt.s32.totalorder %s23_s19, %s23_s19 }
   0x7   :  { %p198_p0 = scmp.ne.s32.totalorder %s23_s19, %s197_s22  ;;  %p203_p2 = scmp.lt.s32.totalorder %s197_s22, %s197_s22 }
   0x9   :  { %p204_p3 = por %p203_p2, %p202_p1 }
   0xb   :  { %p205_p4 = pnand %p204_p3, %p198_p0 }
   0xd   :  { %208 = shalt.err (!%p205_p4)
}
   0xe   :  { %25 = dma.hbm_to_vmem [thread:$0]  %s348_s0, 128, %s23_s19, [#allocation4]  }
   0xf   :  { %s217_s25 = scalar_lea.vmem %s33_s21, 128  ;;  %p222_p6 = scmp.lt.s32.totalorder %s33_s21, %s33_s21 }
  0x10   :  { %p218_p5 = scmp.ne.s32.totalorder %s33_s21, %s217_s25  ;;  %p223_p7 = scmp.lt.s32.totalorder %s217_s25, %s217_s25 }
  0x12   :  { %p224_p8 = por %p223_p7, %p222_p6 }
  0x14   :  { %p225_p9 = pnand %p224_p8, %p218_p5 }
  0x16   :  { %228 = shalt.err (!%p225_p9)
}
  0x17   :  { %35 = dma.hbm_to_vmem [thread:$0]  %s349_s1, 128, %s33_s21, [#allocation8]  }
  0x18   :  { %s42_s30 = sshll.u32 %s350_s2, 4  ;;  %s52_s0 = sshll.u32 %s351_s3, 4  ;;  %s43_s30 = int_to_ptr.vmem [resolvable:$true] %s42_s30  ;;  %s53_s0 = int_to_ptr.vmem [resolvable:$true] %s52_s0 }
  0x19   :  { %s229_s8 = scalar_lea.vmem %s43_s30, 16  ;;  %p234_p11 = scmp.lt.s32.totalorder %s43_s30, %s43_s30 }
  0x1a   :  { %p230_p10 = scmp.ne.s32.totalorder %s43_s30, %s229_s8  ;;  %p235_p12 = scmp.lt.s32.totalorder %s229_s8, %s229_s8 }
  0x1c   :  { %p236_p13 = por %p235_p12, %p234_p11 }
  0x1e   :  { %p237_p0 = pnand %p236_p13, %p230_p10 }
  0x20   :  { %240 = shalt.err (!%p237_p0)
}
  0x21   :  { %s285_s9 = smov [#allocation9]   ;;  %s241_s1 = scalar_lea.vmem %s53_s0, 16 }
  0x22   :  { %45 = dma.vmem_to_smem %s43_s30, 16, %s285_s9, [#allocation6]  }
  0x23   :  { %p242_p1 = scmp.ne.s32.totalorder %s53_s0, %s241_s1  ;;  %p246_p2 = scmp.lt.s32.totalorder %s53_s0, %s53_s0 }
  0x24   :  { %p247_p3 = scmp.lt.s32.totalorder %s241_s1, %s241_s1 }
  0x26   :  { %p248_p4 = por %p247_p3, %p246_p2 }
  0x28   :  { %p249_p5 = pnand %p248_p4, %p242_p1 }
  0x2a   :  { %252 = shalt.err (!%p249_p5)
}
  0x2b   :  { %s286_s2 = smov [#allocation10]  }
  0x2c   :  { %55 = dma.vmem_to_smem %s53_s0, 16, %s286_s2, [#allocation11]  }
  0x2d   :  { %273 = dma.done.wait [#allocation4], 128  }
  0x2e   :  { %274 = vsyncadd [#allocation4], 4294967168 }
  0x2f   :  { %275 = dma.done.wait [#allocation8], 128  }
  0x30   :  { %276 = vsyncadd [#allocation8], 4294967168 }
  0x31   :  { %277 = dma.done.wait [#allocation6], 16  }
  0x32   :  { %278 = vsyncadd [#allocation6], 4294967280 }
  0x33   :  { %279 = dma.done.wait [#allocation11], 16  }
  0x34   :  { %280 = vsyncadd [#allocation11], 4294967280 }
  0x35   :  { %70 = sfence }
  0x36   :  { %v71_v0 = vld [vmem:[#allocation3] sm:$0xff]  ;;  %s74_s3 = sld [smem:[#allocation9]]  ;;  %v134_v25 = vld [vmem:[#allocation7] sm:$0xff]  ;;  %v136_v26 = vstv %s352_s4  ;;  %s287_s27 = smov [#allocation12]  }
  0x37   :  { %v72_v1 = vshra.s32 %v71_v0, 16  ;;  %s165_s10 = sld [smem:[#allocation9 + $0x1]]  ;;  %v73_v3 = vand.u32 65535, %v71_v0  ;;  %v137_v34 = vadd.f32 %v136_v26, %v134_v25  ;;  %s153_s4 = sshll.u32 %s287_s27, 4  ;;  %s154_s4 = int_to_ptr.vmem [resolvable:$true] %s153_s4 }
  0x38   :  { %s166_s11 = sld [smem:[#allocation9 + $0x2]]  ;;  %s253_s28 = scalar_lea.vmem %s154_s4, 128 }
  0x39   :  { %s167_s12 = sld [smem:[#allocation9 + $0x3]]  ;;  %vm76_vm0 = vcmp.eq.s32.totalorder %v72_v1, 1  ;;  %vm80_vm1 = vcmp.eq.s32.totalorder %v72_v1, 2  ;;  %vm84_vm2 = vcmp.eq.s32.totalorder %v72_v1, 3  ;;  %vm98_vm3 = vcmp.eq.s32.totalorder %v73_v3, 1  ;;  %p254_p6 = scmp.ne.s32.totalorder %s154_s4, %s253_s28 }
  0x3a   :  { %s330_s13 = sld [smem:[#allocation9 + $0x4]]  ;;  %vm102_vm4 = vcmp.eq.s32.totalorder %v73_v3, 2  ;;  %vm88_vm5 = vcmp.eq.s32.totalorder %v72_v1, 4  ;;  %vm106_vm6 = vcmp.eq.s32.totalorder %v73_v3, 3  ;;  %vm110_vm7 = vcmp.eq.s32.totalorder %v73_v3, 4  ;;  %p258_p7 = scmp.lt.s32.totalorder %s154_s4, %s154_s4 }
  0x3b   :  { %s332_s14 = sld [smem:[#allocation9 + $0x5]]  ;;  %vm92_vm8 = vcmp.eq.s32.totalorder %v72_v1, 5  ;;  %vm114_vm9 = vcmp.eq.s32.totalorder %v73_v3, 5  ;;  %vm118_vm10 = vcmp.eq.s32.totalorder %v73_v3, 6  ;;  %vm122_vm11 = vcmp.eq.s32.totalorder %v73_v3, 7  ;;  %p259_p8 = scmp.lt.s32.totalorder %s253_s28, %s253_s28 }
  0x3c   :  { %v75_v2 = vstv %s74_s3  ;;  %s96_s15 = sld [smem:[#allocation10]]  ;;  %vm126_vm12 = vcmp.eq.s32.totalorder %v73_v3, 8  ;;  %vm130_vm13 = vcmp.eq.s32.totalorder %v73_v3, 9 }
  0x3d   :  { %v78_v4 = vstv %s165_s10  ;;  %s170_s16 = sld [smem:[#allocation10 + $0x1]]  ;;  %p260_p9 = por %p259_p8, %p258_p7 }
  0x3e   :  { %v79_v5 = vsel %vm76_vm0, %v78_v4, %v75_v2  ;;  %v82_v6 = vstv %s166_s11  ;;  %s171_s17 = sld [smem:[#allocation10 + $0x2]] }
  0x3f   :  { %s172_s18 = sld [smem:[#allocation10 + $0x3]]  ;;  %v83_v7 = vsel %vm80_vm1, %v82_v6, %v79_v5  ;;  %v86_v8 = vstv %s167_s12  ;;  %p261_p10 = pnand %p260_p9, %p254_p6 }
  0x40   :  { %s334_s19 = sld [smem:[#allocation10 + $0x4]]  ;;  %v87_v11 = vsel %vm84_vm2, %v86_v8, %v83_v7  ;;  %v90_v12 = vstv %s330_s13 }
  0x41   :  { %s174_s20 = sld [smem:[#allocation10 + $0x5]]  ;;  %v91_v19 = vsel %vm88_vm5, %v90_v12, %v87_v11  ;;  %v94_v20 = vstv %s332_s14 }
  0x42   :  { %v97_v9 = vstv %s96_s15  ;;  %s175_s21 = sld [smem:[#allocation10 + $0x6]]  ;;  %v95_v29 = vsel %vm92_vm8, %v94_v20, %v91_v19 }
  0x43   :  { %v100_v10 = vstv %s170_s16  ;;  %s176_s22 = sld [smem:[#allocation10 + $0x7]] }
  0x44   :  { %v101_v13 = vsel %vm98_vm3, %v100_v10, %v97_v9  ;;  %v104_v14 = vstv %s171_s17  ;;  %s177_s23 = sld [smem:[#allocation10 + $0x8]] }
  0x45   :  { %v105_v15 = vsel %vm102_vm4, %v104_v14, %v101_v13  ;;  %v108_v16 = vstv %s172_s18  ;;  %s178_s24 = sld [smem:[#allocation10 + $0x9]] }
  0x46   :  { %v109_v17 = vsel %vm106_vm6, %v108_v16, %v105_v15  ;;  %v112_v18 = vstv %s334_s19 }
  0x47   :  { %v113_v21 = vsel %vm110_vm7, %v112_v18, %v109_v17  ;;  %v116_v22 = vstv %s174_s20 }
  0x48   :  { %v117_v23 = vsel %vm114_vm9, %v116_v22, %v113_v21  ;;  %v120_v24 = vstv %s175_s21 }
  0x49   :  { %v121_v27 = vsel %vm118_vm10, %v120_v24, %v117_v23  ;;  %v124_v28 = vstv %s176_s22 }
  0x4a   :  { %v125_v30 = vsel %vm122_vm11, %v124_v28, %v121_v27  ;;  %v128_v31 = vstv %s177_s23 }
  0x4b   :  { %v129_v32 = vsel %vm126_vm12, %v128_v31, %v125_v30  ;;  %v132_v33 = vstv %s178_s24 }
  0x4c   :  { %v133_v35 = vsel %vm130_vm13, %v132_v33, %v129_v32 }
  0x4d   :  { %v138_v36 = vadd.f32 %v133_v35, %v95_v29 }
  0x4f   :  { %v139_v37 = vadd.f32 %v138_v36, %v137_v34 }
  0x51   :  { %v179_v38 = vmul.f32 -1.442695, %v139_v37 }
  0x53   :  { %185 = vpow2.f32 %v179_v38 }
  0x60   :  { %v186_v39 = vpop.eup %185 }
  0x61   :  { %v143_v40 = vadd.f32 1.0, %v186_v39 }
  0x63   :  { %187 = vrcp.f32 %v143_v40 }
  0x70   :  { %v188_v41 = vpop.eup %187 }
  0x71   :  { %146 = vst [vmem:[#allocation12] sm:$0xff] %v188_v41 }
  0x72   :  { %264 = shalt.err (!%p261_p10)
}
  0x73   :  { %156 = dma.vmem_to_hbm [thread:$0]  %s154_s4, 128, %s353_s5, [#allocation5]  }
  0x74   :  { %281 = dma.done.wait [#allocation5], 128  }
  0x75   :  { %282 = vsyncadd [#allocation5], 4294967168 }
  0x76   :  { %160 = vsyncpa [#allocation4], 1 }
  0x77   :  { %161 = vsyncpa [#allocation8], 1 }
  0x78   :  { %162 = vsyncpa [#allocation5], 1 }
  0x79   :  { %163 = vsyncpa [#allocation6], 1 }
  0x7a   :  { %164 = vsyncpa [#allocation11], 1 }

</bundles_post_ra>
